<compile_context>
chip_gen: v6e
topology: v6e:2x2x1
jax: 0.10.0
libtpu: 0.0.40
codegen_flags: <defaults>
</compile_context>

<pallas_src>
import functools

import jax
import jax.numpy as jnp
from jax.experimental import pallas as pl
from jax.experimental.pallas import tpu as pltpu


# ----------------------------------------------------------------------------
# Kernel
# ----------------------------------------------------------------------------
def conv1d_block_kernel(rhs_ref, w_ref, g_ref, beta_ref, o_ref, *, eps):
    """One C_out tile: conv (even+odd positions in one matmul) + fused BN +
    ReLU + MaxPool(2,2).

    Per-grid-step shapes:
      rhs_ref  : (K*C_in, 2*N*Lo)  packed im2col, even | odd halves (MXU dtype)
      w_ref    : (tile_co, K*C_in) conv taps folded into the contraction dim
      g_ref    : (tile_co, 1)      BN gamma (f32)
      beta_ref : (tile_co, 1)      BN beta  (f32)
      o_ref    : (tile_co, N*Lo)   pooled output (lane-dense)
    """
    nlo = o_ref.shape[-1]          # N * Lo
    cnt = 2 * nlo                  # elements per channel seen by BatchNorm

    # Conv at all output positions, both pooling phases, in one MXU call.
    y = jnp.dot(w_ref[...], rhs_ref[...],
                preferred_element_type=jnp.float32)        # (tile_co, 2*N*Lo)

    # ---- BatchNorm1d (training mode, biased variance), mean-centered --------
    # NOTE: the conv bias cancels exactly under train-mode BN
    #       ((y+b) - mean(y+b) == y - mean(y)), so it never enters the kernel.
    mean = jnp.sum(y, axis=-1, keepdims=True) * (1.0 / cnt)
    d = y - mean                                           # centered conv out
    var = jnp.sum(d * d, axis=-1, keepdims=True) * (1.0 / cnt)

    scale = g_ref[...].astype(jnp.float32) * jax.lax.rsqrt(var + eps)
    a = d * scale + beta_ref[...].astype(jnp.float32)      # BN affine

    # ---- MaxPool(2,2) then a single ReLU (max is monotone) ------------------
    pooled = jnp.maximum(a[:, :nlo], a[:, nlo:])
    o_ref[...] = jnp.maximum(pooled, 0.0).astype(o_ref.dtype)


# ----------------------------------------------------------------------------
# Generation-aware sizing helpers (static Python, runs at trace time)
# ----------------------------------------------------------------------------
def _tpu_caps():
    """Returns (tile_co_cap, vmem_limit_bytes, prefer_multi_tile)."""
    try:
        kind = jax.devices()[0].device_kind.lower()
    except Exception:  # pragma: no cover
        kind = ""
    if "v6" in kind:
        # v6e: 128 MiB VMEM, 256-wide MXU, single TensorCore.
        return 256, 96 * 2**20, False
    if "v5e" in kind or "v5 lite" in kind or "v5litepod" in kind:
        # v5e: 128 MiB VMEM, 128-wide MXU, single TensorCore.
        return 128, 96 * 2**20, False
    # v7x (64 MiB VMEM, 2 TensorCores) and unknown/other: conservative VMEM,
    # prefer >= 2 C_out tiles so the "parallel" grid axis feeds both cores.
    return 128, 48 * 2**20, True


def _pick_tile_co(c_out, cap, prefer_multi):
    if c_out % 8 != 0:
        return c_out                       # full-array block (no sublane issue)
    cands = [t for t in range(8, min(cap, c_out) + 1, 8) if c_out % t == 0]
    tile = max(cands) if cands else c_out
    if prefer_multi and tile == c_out:
        smaller = [t for t in cands if t < c_out]
        if smaller:
            tile = max(smaller)            # guarantee >= 2 grid steps (megacore)
    return tile


def _vmem_estimate(tile, kc, nlo, in_itemsize, out_itemsize):
    cols = 2 * nlo
    rhs_b = 2 * kc * cols * in_itemsize           # constant block, double-buffered
    w_b = 2 * tile * kc * in_itemsize
    par_b = 4 * tile * 4
    out_b = 2 * tile * nlo * out_itemsize
    tmp_b = 4 * tile * cols * 4                   # y, d, a f32 live values + slack
    return rhs_b + w_b + par_b + out_b + tmp_b + (2 << 20)


# ----------------------------------------------------------------------------
# Wrapper
# ----------------------------------------------------------------------------
def conv1d_block(x, w, b, gamma, beta, *, padding=1, pool=2, eps=1e-5,
                 mxu_dtype=jnp.bfloat16, tile_co=None):
    """x: (N, C_in, L) PyTorch NCL layout.  Returns (N, C_out, L_out).

    `b` (conv bias) is accepted for API parity with the PyTorch module but is
    provably a no-op under train-mode BatchNorm, so it is not fed to the
    kernel.
    """
    del b  # cancels exactly inside train-mode BatchNorm (see kernel note)

    N, C_in, L = x.shape
    C_out, C_in_w, K = w.shape
    assert C_in_w == C_in
    assert pool == 2, "kernel implements MaxPool1d(kernel=2, stride=2)"
    L_conv = L + 2 * padding - (K - 1)            # conv stride = 1
    # Even/odd pooling decomposition requires an even conv length (when true,
    # it matches PyTorch's floor-mode MaxPool1d exactly).
    assert L_conv % 2 == 0, "conv output length must be even"
    Lo = L_conv // 2
    NLo = N * Lo
    KC = K * C_in

    # --- generation-aware tile / VMEM sizing ---------------------------------
    tile_cap, vmem_limit, prefer_multi = _tpu_caps()
    in_isz = jnp.dtype(mxu_dtype).itemsize
    out_isz = jnp.dtype(x.dtype).itemsize
    if tile_co is None:
        tile_co = _pick_tile_co(C_out, tile_cap, prefer_multi)
        while (_vmem_estimate(tile_co, KC, NLo, in_isz, out_isz)
               > vmem_limit - (8 << 20)
               and tile_co % 16 == 0 and C_out % (tile_co // 2) == 0):
            tile_co //= 2
    assert C_out % tile_co == 0
    assert tile_co == C_out or tile_co % 8 == 0
    n_tiles = C_out // tile_co

    # --- grid-invariant im2col, built ONCE in the wrapper (fused producer) ---
    # rhs[k*C_in + c, p*NLo + n*Lo + j] = xp[n, c, k + 2*j + p], p in {0, 1}.
    xp = jnp.pad(x, ((0, 0), (0, 0), (padding, padding)))    # (N, C_in, Lp)
    phases = []
    for p in range(2):                                        # even, odd
        taps = jnp.stack(
            [xp[:, :, k + p: k + p + L_conv: 2] for k in range(K)],
            axis=0)                                           # (K, N, C_in, Lo)
        phases.append(jnp.transpose(taps, (0, 2, 1, 3)).reshape(KC, NLo))
    rhs = jnp.concatenate(phases, axis=1).astype(mxu_dtype)   # (KC, 2*NLo)

    # Fold the K taps into the contraction dim: (C_out, K*C_in).
    w2 = jnp.transpose(w, (0, 2, 1)).reshape(C_out, KC).astype(mxu_dtype)
    g2 = gamma.reshape(C_out, 1).astype(jnp.float32)
    be2 = beta.reshape(C_out, 1).astype(jnp.float32)

    cost = pl.CostEstimate(
        flops=int(2 * C_out * KC * 2 * NLo + 10 * C_out * 2 * NLo),
        transcendentals=int(C_out),
        bytes_accessed=int(KC * 2 * NLo * in_isz + C_out * KC * in_isz
                           + C_out * NLo * out_isz + 3 * C_out * 4),
    )

    out2d = pl.pallas_call(
        functools.partial(conv1d_block_kernel, eps=eps),
        out_shape=jax.ShapeDtypeStruct((C_out, NLo), x.dtype),
        grid_spec=pltpu.PrefetchScalarGridSpec(
            num_scalar_prefetch=0,
            grid=(n_tiles,),
            in_specs=[
                # Packed im2col: constant block index -> DMA'd once, reused.
                pl.BlockSpec((KC, 2 * NLo), lambda i: (0, 0)),
                pl.BlockSpec((tile_co, KC), lambda i: (i, 0)),
                pl.BlockSpec((tile_co, 1), lambda i: (i, 0)),
                pl.BlockSpec((tile_co, 1), lambda i: (i, 0)),
            ],
            out_specs=pl.BlockSpec((tile_co, NLo), lambda i: (i, 0)),
        ),
        compiler_params=pltpu.CompilerParams(
            # Per-channel BN => C_out tiles fully independent: megacore split.
            dimension_semantics=("parallel",),
            vmem_limit_bytes=int(vmem_limit),
        ),
        cost_estimate=cost,
    )(rhs, w2, g2, be2)

    # (C_out, N*Lo) -> (N, C_out, Lo)
    return jnp.transpose(out2d.reshape(C_out, N, Lo), (1, 0, 2))


# ----------------------------------------------------------------------------
# Plain-JAX reference (PyTorch semantics, train-mode BatchNorm)
# ----------------------------------------------------------------------------
def conv1d_block_ref(x, w, b, gamma, beta, padding=1, pool=2, eps=1e-5):
    N, C_in, L = x.shape
    C_out, _, K = w.shape
    L_conv = L + 2 * padding - (K - 1)
    xp = jnp.pad(x, ((0, 0), (0, 0), (padding, padding)))
    y = jnp.zeros((N, C_out, L_conv), jnp.float32)
    for k in range(K):
        y = y + jnp.einsum('oc,ncl->nol', w[:, :, k], xp[:, :, k:k + L_conv],
                           precision=jax.lax.Precision.HIGHEST)
    y = y + b[None, :, None]
    mean = y.mean(axis=(0, 2), keepdims=True)
    var = y.var(axis=(0, 2), keepdims=True)      # biased, as in PyTorch BN fwd
    y = (y - mean) / jnp.sqrt(var + eps)
    y = y * gamma[None, :, None] + beta[None, :, None]
    y = jnp.maximum(y, 0.0)
    y = y.reshape(N, C_out, L_conv // pool, pool).max(axis=-1)
    return y


# ----------------------------------------------------------------------------
# Self-test
# ----------------------------------------------------------------------------
def _run_case(name, key, N, C_in, C_out, L, K, tile_co=None):
    k1, k2, k3, k4, k5 = jax.random.split(key, 5)
    x = jax.random.normal(k1, (N, C_in, L), jnp.float32)
    w = jax.random.normal(k2, (C_out, C_in, K), jnp.float32) * 0.2
    b = jax.random.normal(k3, (C_out,), jnp.float32) * 0.1
    gamma = 1.0 + 0.2 * jax.random.normal(k4, (C_out,), jnp.float32)
    beta = 0.1 * jax.random.normal(k5, (C_out,), jnp.float32)

    ref = conv1d_block_ref(x, w, b, gamma, beta)
    Lo = (L + 2 - (K - 1)) // 2

    run = jax.jit(conv1d_block,
                  static_argnames=("padding", "pool", "eps", "mxu_dtype",
                                   "tile_co"))

    # f32 MXU path: tight check of the fused structure / math.
    out_f32 = jax.block_until_ready(
        run(x, w, b, gamma, beta, mxu_dtype=jnp.float32, tile_co=tile_co))
    assert out_f32.shape == (N, C_out, Lo), (name, out_f32.shape)
    assert jnp.allclose(out_f32, ref, atol=1e-3, rtol=1e-3), \
        f"{name}: f32 mismatch vs reference"

    # bf16 MXU path (default fast path): bf16 operands, f32 accumulation.
    out_bf16 = jax.block_until_ready(run(x, w, b, gamma, beta, tile_co=tile_co))
    assert out_bf16.shape == (N, C_out, Lo), (name, out_bf16.shape)
    assert jnp.allclose(out_bf16, ref, atol=5e-2, rtol=5e-2), \
        f"{name}: bf16 mismatch vs reference"


if __name__ == "__main__":
    key = jax.random.PRNGKey(0)
    k_a, k_b = jax.random.split(key)

    # Small case matching the module defaults (single C_out tile).
    _run_case("small", k_a, N=2, C_in=4, C_out=8, L=16, K=3)

    # Slightly larger case that exercises the multi-tile "parallel" grid and
    # a fully lane-dense (N*Lo = 128) output block.
    _run_case("tiled", k_b, N=4, C_in=8, C_out=32, L=64, K=3, tile_co=16)

    print("KERNEL_OK")
</pallas_src>

<mosaic_0001>
module attributes {stable_mosaic.version = 11 : i64} {
  func.func @conv1d_block_kernel(%arg0: i32, %arg1: memref<12x32xf32, #tpu.memory_space<vmem>>, %arg2: memref<8x12xf32, #tpu.memory_space<vmem>>, %arg3: memref<8x1xf32, #tpu.memory_space<vmem>>, %arg4: memref<8x1xf32, #tpu.memory_space<vmem>>, %arg5: memref<8x16xf32, #tpu.memory_space<vmem>>) attributes {dimension_semantics = [#tpu.dimension_semantics<parallel>], iteration_bounds = array<i64: 1>, scalar_prefetch = 0 : i64, scratch_operands = 0 : i64, tpu.core_type = #tpu.core_type<tc>, window_params = [{pipeline_mode = #tpu.pipeline_mode<synchronous>, transform_indices = @transform_0, window_bounds = array<i64: 12, 32>}, {transform_indices = @transform_1, window_bounds = array<i64: 8, 12>}, {transform_indices = @transform_2, window_bounds = array<i64: 8, 1>}, {transform_indices = @transform_3, window_bounds = array<i64: 8, 1>}, {transform_indices = @transform_4, window_bounds = array<i64: 8, 16>}]} {
    %c0 = arith.constant 0 : index
    %c0_0 = arith.constant 0 : index
    %0 = vector.load %arg2[%c0, %c0_0] : memref<8x12xf32, #tpu.memory_space<vmem>>, vector<8x12xf32>
    %c0_1 = arith.constant 0 : index
    %c0_2 = arith.constant 0 : index
    %1 = vector.load %arg1[%c0_1, %c0_2] : memref<12x32xf32, #tpu.memory_space<vmem>>, vector<12x32xf32>
    %cst = arith.constant dense<0.000000e+00> : vector<8x32xf32>
    %2 = tpu.matmul %0, %1, %cst {dimension_numbers = #tpu.dot_dimension_numbers<[1], [0], [0], [1], [0, 0, 1, 1], [], []>} : vector<8x12xf32>, vector<12x32xf32>, vector<8x32xf32> -> vector<8x32xf32>
    %cst_3 = arith.constant dense<0.000000e+00> : vector<8xf32>
    %3 = vector.multi_reduction <add>, %2, %cst_3 [1] : vector<8x32xf32> to vector<8xf32>
    %4 = vector.shape_cast %3 : vector<8xf32> to vector<8x1xf32>
    %cst_4 = arith.constant 3.125000e-02 : f32
    %5 = vector.broadcast %cst_4 : f32 to vector<8x1xf32>
    %6 = arith.mulf %4, %5 : vector<8x1xf32>
    %7 = vector.broadcast %6 : vector<8x1xf32> to vector<8x32xf32>
    %8 = arith.subf %2, %7 : vector<8x32xf32>
    %9 = arith.mulf %8, %8 : vector<8x32xf32>
    %cst_5 = arith.constant dense<0.000000e+00> : vector<8xf32>
    %10 = vector.multi_reduction <add>, %9, %cst_5 [1] : vector<8x32xf32> to vector<8xf32>
    %11 = vector.shape_cast %10 : vector<8xf32> to vector<8x1xf32>
    %cst_6 = arith.constant 3.125000e-02 : f32
    %12 = vector.broadcast %cst_6 : f32 to vector<8x1xf32>
    %13 = arith.mulf %11, %12 : vector<8x1xf32>
    %c0_7 = arith.constant 0 : index
    %c0_8 = arith.constant 0 : index
    %14 = vector.load %arg3[%c0_7, %c0_8] : memref<8x1xf32, #tpu.memory_space<vmem>>, vector<8x1xf32>
    %cst_9 = arith.constant 9.99999974E-6 : f32
    %15 = vector.broadcast %cst_9 : f32 to vector<8x1xf32>
    %16 = arith.addf %13, %15 : vector<8x1xf32>
    %17 = math.rsqrt %16 : vector<8x1xf32>
    %18 = arith.mulf %14, %17 : vector<8x1xf32>
    %19 = vector.broadcast %18 : vector<8x1xf32> to vector<8x32xf32>
    %20 = arith.mulf %8, %19 : vector<8x32xf32>
    %c0_10 = arith.constant 0 : index
    %c0_11 = arith.constant 0 : index
    %21 = vector.load %arg4[%c0_10, %c0_11] : memref<8x1xf32, #tpu.memory_space<vmem>>, vector<8x1xf32>
    %22 = vector.broadcast %21 : vector<8x1xf32> to vector<8x32xf32>
    %23 = arith.addf %20, %22 : vector<8x32xf32>
    %24 = vector.extract_strided_slice %23 {offsets = [0, 0], sizes = [8, 16], strides = [1, 1]} : vector<8x32xf32> to vector<8x16xf32>
    %25 = vector.extract_strided_slice %23 {offsets = [0, 16], sizes = [8, 16], strides = [1, 1]} : vector<8x32xf32> to vector<8x16xf32>
    %26 = arith.maximumf %24, %25 : vector<8x16xf32>
    %cst_12 = arith.constant 0.000000e+00 : f32
    %27 = vector.broadcast %cst_12 : f32 to vector<8x16xf32>
    %28 = arith.maximumf %26, %27 : vector<8x16xf32>
    %c0_13 = arith.constant 0 : index
    %c0_14 = arith.constant 0 : index
    %29 = vector.load %arg5[%c0_13, %c0_14] : memref<8x16xf32, #tpu.memory_space<vmem>>, vector<8x16xf32>
    tpu.vector_store %arg5[%c0_13, %c0_14], %28 {strides = array<i32>} : memref<8x16xf32, #tpu.memory_space<vmem>>, vector<8x16xf32>,
    return
  }
  func.func @transform_0(%arg0: i32) -> (i32, i32) {
    %c0_i32 = arith.constant 0 : i32
    %c0_i32_0 = arith.constant 0 : i32
    %c0_i32_1 = arith.constant 0 : i32
    return %c0_i32, %c0_i32_0 : i32, i32
  }
  func.func @transform_1(%arg0: i32) -> (i32, i32) {
    %c0_i32 = arith.constant 0 : i32
    %c0_i32_0 = arith.constant 0 : i32
    return %arg0, %c0_i32 : i32, i32
  }
  func.func @transform_2(%arg0: i32) -> (i32, i32) {
    %c0_i32 = arith.constant 0 : i32
    %c0_i32_0 = arith.constant 0 : i32
    return %arg0, %c0_i32 : i32, i32
  }
  func.func @transform_3(%arg0: i32) -> (i32, i32) {
    %c0_i32 = arith.constant 0 : i32
    %c0_i32_0 = arith.constant 0 : i32
    return %arg0, %c0_i32 : i32, i32
  }
  func.func @transform_4(%arg0: i32) -> (i32, i32) {
    %c0_i32 = arith.constant 0 : i32
    %c0_i32_0 = arith.constant 0 : i32
    return %arg0, %c0_i32 : i32, i32
  }
}

</mosaic_0001>

<bundles_post_ra>
// kernel: conv1d_block.1
= control target key start
LH: loop header
LB: loop body
LE: loop exit
PB: predicated region body
PF: predicated region fallthrough
CT: control target
= control target key end

     0   :  { %vm24_vm0 = vcmask 1043456   ;;  %v158_v0 = vmov 0.0   ;;  %vm159_vm1 = vmmov 0   ;;  %vm20_vm2 = vcmask 97280   ;;  %s161_s23 = smov 112   ;;  %s205_s0 = inlined_call_operand.vmem [shape: f32[12,32], index: 0, kind: input, shape index: {}]   ;;  %s206_s1 = inlined_call_operand.vmem [shape: f32[8,12], index: 1, kind: input, shape index: {}]   ;;  %s207_s2 = inlined_call_operand.vmem [shape: f32[8,1], index: 2, kind: input, shape index: {}]   ;;  %s208_s3 = inlined_call_operand.vmem [shape: f32[8,1], index: 3, kind: input, shape index: {}]   ;;  %s209_s4 = inlined_call_operand.vmem [shape: f32[8,16], index: 4, kind: output, shape index: {}]  }
   0x1   :  { %143 = vmatprep.subr.mxu0 %v158_v0  ;;  %v19_v1 = vld [vmem:[%s205_s0 + $0x8] sm:$0xf]  ;;  %v18_v2 = vld [vmem:[%s205_s0] sm:$0xff]  ;;  %147 = vmatprep.mubr.msk.f32.mxu0 %vm159_vm1, %v158_v0  ;;  %vm98_vm3 = vcmask 261120   ;;  %v160_v12 = vmov 0   ;;  %vm132_vm4 = vcmask 130048  }
   0x2   :  { %144 = vmatpush3.msk.msra.mxu0 %vm24_vm0, %v19_v1  ;;  %v17_v3 = vld [vmem:[%s206_s1] sm:$0xff]  ;;  %154 = vset.pattern.permute.xlu1 %v160_v12 }
   0x3   :  { %145 = vmatprep.subr.mxu0 %v158_v0  ;;  %155 = vset.pattern.permute.xlu0 %v160_v12  ;;  %v109_v16 = vld [vmem:[%s207_s2] sm:$0xff] }
   0x4   :  { %146 = vmatpush3.msra.mxu0 %v18_v2  ;;  %v119_v19 = vld [vmem:[%s208_s3] sm:$0xff] }
   0x5   :  { %148 = vmatmul.mubr.msk.f32.vlgmr.msra.gmra.mxu0 %vm20_vm2, %v17_v3 }
  0xc5   :  { %v94_v4 = vpop.f32.mrf.mxu0 }
  0xc6   :  { %v99_v5 = vsel %vm98_vm3, %v94_v4, 0.0 }
  0xc7   :  { %100 = vadd.xlane.f32.xlu0 %v99_v5  ;;  %v149_v6 = vpop.f32.mrf.mxu0 }
 0x150   :  { %v101_v7 = vpop.xlane.xlu0 %100 }
 0x151   :  { %v102_v8 = vmul.f32 0.03125, %v101_v7 }
 0x153   :  { %v103_v9 = vsub.f32 %v94_v4, %v102_v8 }
 0x155   :  { %v104_v10 = vmul.f32 %v103_v9, %v103_v9 }
 0x157   :  { %v105_v11 = vsel %vm98_vm3, %v104_v10, 0.0 }
 0x158   :  { %106 = vadd.xlane.f32.xlu0 %v105_v11 }
 0x1e1   :  { %v107_v13 = vpop.xlane.xlu0 %106 }
 0x1e2   :  { %v108_v14 = vmul.f32 0.03125, %v107_v13 }
 0x1e4   :  { %v110_v15 = vadd.f32 1e-05, %v108_v14 }
 0x1e6   :  { %156 = vrsqrt.f32 %v110_v15 }
 0x1f3   :  { %v157_v17 = vpop.eup %156 }
 0x1f4   :  { %v112_v18 = vmul.f32 %v157_v17, %v109_v16 }
 0x1f6   :  { %115 = vperm.xlu1 %154, %v112_v18  }
 0x1fa   :  { %122 = vperm.xlu1 %154, %v119_v19  }
 0x271   :  { %v116_v20 = vpop.permute.xlu1 %115 }
 0x272   :  { %v118_v21 = vmul.f32 %v116_v20, %v103_v9 }
 0x275   :  { %v123_v22 = vpop.permute.xlu1 %122 }
 0x276   :  { %v125_v23 = vadd.f32 %v123_v22, %v118_v21 }
 0x278   :  { %127 = vrot.lane.b32.xlu0 %v125_v23, %s161_s23 }
 0x2ea   :  { %v128_v24 = vpop.permute.xlu0 %127 }
 0x2eb   :  { %v130_v25 = vmax.f32 %v125_v23, %v128_v24 }
 0x2ed   :  { %v131_v26 = vmax.f32 %v130_v25, 0.0 }
 0x2ef   :  { %133 = vst.msk [vmem:[%s209_s4] sm:$0xff] %vm132_vm4, %v131_v26 }

</bundles_post_ra>
